<compile_context>
chip_gen: v7x
topology: tpu7x:2x2x1
jax: 0.10.0
libtpu: 0.0.40
codegen_flags: <defaults>
</compile_context>

<pallas_src>
import functools

import jax
import jax.numpy as jnp
from jax.experimental import pallas as pl
from jax.experimental.pallas import tpu as pltpu

_LANE = 128


def _round_up(x, m):
    return ((x + m - 1) // m) * m


def _padded_graph_size(n):
    """Pad N so tiles can be large multiples of 128 (zero rows/cols of G are harmless)."""
    if n <= 256:
        return _round_up(n, _LANE)
    if n < 4096:
        return _round_up(n, 256)
    return _round_up(n, 512)


def _tile_cap():
    """Per-chip tile cap: v5e's 16 MiB scoped-VMEM default wants <=1024 tiles;
    v6e/v7x comfortably fit 2048 (8 MiB bf16 G tile x 2 buffers < 32 MiB default)."""
    try:
        kind = jax.devices()[0].device_kind.lower()
    except Exception:
        return 1024
    return 1024 if "v5" in kind else 2048


def _pick_tiles(n_pad, cap):
    """Largest multiples of 128 that divide n_pad and are <= cap.  The row tile
    keeps >= 2 row blocks when possible so the 'parallel' row axis actually
    shards across v7x's two TensorCores."""
    assert n_pad % _LANE == 0

    def best(min_blocks):
        t_best, t = _LANE, _LANE
        limit = min(cap, n_pad)
        while t <= limit:
            if n_pad % t == 0 and n_pad // t >= min_blocks:
                t_best = t
            t += _LANE
        return t_best

    tm = best(2) if n_pad >= 2 * _LANE else n_pad
    tk = best(1)
    return tm, tk


# ----------------------------------------------------------------------------
# Kernel 1: one fused LightGCN propagation layer
#   mm      = G @ E_l                    (bf16 x bf16 -> f32 accumulate on MXU)
#   acc_out = acc_in + mm                (running layer sum, written in place)
#   E_{l+1} = bf16(mm)                   (next-layer streamed operand)
# ----------------------------------------------------------------------------
def _gcn_layer_kernel(g_ref, e_ref, acc_in_ref, acc_out_ref, e_next_ref, mm_ref):
    k = pl.program_id(1)

    @pl.when(k == 0)
    def _():
        mm_ref[...] = jnp.zeros_like(mm_ref)

    mm_ref[...] += jnp.dot(g_ref[...], e_ref[...],
                           preferred_element_type=jnp.float32)

    @pl.when(k == pl.num_programs(1) - 1)
    def _():
        acc_out_ref[...] = acc_in_ref[...] + mm_ref[...]
        e_next_ref[...] = mm_ref[...].astype(e_next_ref.dtype)


def gcn_layer_fused(graph_pad_bf16, e_bf16, acc_f32):
    """One propagation layer on padded, lane-dense operands."""
    n_pad = graph_pad_bf16.shape[0]
    d_pad = e_bf16.shape[1]
    tm, tk = _pick_tiles(n_pad, _tile_cap())
    grid = (n_pad // tm, n_pad // tk)

    cost = pl.CostEstimate(
        flops=2 * n_pad * n_pad * d_pad,
        transcendentals=0,
        bytes_accessed=2 * n_pad * n_pad + 12 * n_pad * d_pad,
    )

    return pl.pallas_call(
        _gcn_layer_kernel,
        out_shape=(jax.ShapeDtypeStruct((n_pad, d_pad), jnp.float32),
                   jax.ShapeDtypeStruct((n_pad, d_pad), jnp.bfloat16)),
        grid_spec=pltpu.PrefetchScalarGridSpec(
            num_scalar_prefetch=0,
            grid=grid,
            in_specs=[
                pl.BlockSpec((tm, tk), lambda i, k: (i, k)),       # G tile (bf16)
                pl.BlockSpec((tk, d_pad), lambda i, k: (k, 0)),    # E_l tile (bf16)
                pl.BlockSpec((tm, d_pad), lambda i, k: (i, 0)),    # running sum (f32)
            ],
            out_specs=[
                pl.BlockSpec((tm, d_pad), lambda i, k: (i, 0)),    # new running sum
                pl.BlockSpec((tm, d_pad), lambda i, k: (i, 0)),    # E_{l+1} (bf16)
            ],
            scratch_shapes=[pltpu.VMEM((tm, d_pad), jnp.float32)],
        ),
        compiler_params=pltpu.CompilerParams(
            dimension_semantics=("parallel", "arbitrary")),
        cost_estimate=cost,
        input_output_aliases={2: 0},   # acc_in is updated in place -> acc_out
    )(graph_pad_bf16, e_bf16, acc_f32)


def lightgcn_propagate(graph_pad_bf16, all_emb_pad, n_layers):
    """LightGCN.computer(): mean of G^l @ E, l = 0..n_layers (padded layouts)."""
    acc = all_emb_pad                          # f32 running layer sum (layer 0)
    e = all_emb_pad.astype(jnp.bfloat16)       # current-layer streamed operand
    for _ in range(n_layers):                  # static host-level layer loop
        acc, e = gcn_layer_fused(graph_pad_bf16, e, acc)
    return acc * (1.0 / float(n_layers + 1))


# ----------------------------------------------------------------------------
# Kernel 2: fused gather + score
#   gamma[b] = <light_out[users[b]], light_out[num_users + items[b]]>
# ----------------------------------------------------------------------------
def _score_kernel(users_ref, items_ref, light_ref, o_ref, u_scr, i_scr, *,
                  num_users, batch):
    # users_ref / items_ref: int32 (batch,) in SMEM (scalar prefetch).
    # light_ref: (n_pad, d_pad) f32 in VMEM.  o_ref: (1, b_pad) f32 lane-dense.
    u_scr[...] = jnp.zeros_like(u_scr)
    i_scr[...] = jnp.zeros_like(i_scr)
    for b in range(batch):                                   # small static B gather
        u_scr[pl.ds(b, 1), :] = light_ref[pl.ds(users_ref[b], 1), :]
        i_scr[pl.ds(b, 1), :] = light_ref[pl.ds(num_users + items_ref[b], 1), :]
    prod = u_scr[...] * i_scr[...]                           # (b_pad, d_pad)
    # One vectorized reduce; transpose keeps the result lane-dense (1, b_pad).
    o_ref[...] = jnp.sum(prod.T, axis=0, keepdims=True)


def lightgcn_score(light_out_pad, users, items, num_users):
    n_pad, d_pad = light_out_pad.shape
    batch = users.shape[0]
    b_pad = _round_up(batch, _LANE)
    kernel = functools.partial(_score_kernel, num_users=num_users, batch=batch)
    # TODO(synk): at realistic N, grid over batch blocks and DMA-gather rows
    # from HBM instead of keeping light_out fully VMEM-resident.
    out = pl.pallas_call(
        kernel,
        out_shape=jax.ShapeDtypeStruct((1, b_pad), jnp.float32),
        grid_spec=pltpu.PrefetchScalarGridSpec(
            num_scalar_prefetch=2,              # users, items -> SMEM
            grid=(1,),
            in_specs=[pl.BlockSpec((n_pad, d_pad), lambda i, u, it: (0, 0))],
            out_specs=pl.BlockSpec((1, b_pad), lambda i, u, it: (0, 0)),
            scratch_shapes=[pltpu.VMEM((b_pad, d_pad), jnp.float32),
                            pltpu.VMEM((b_pad, d_pad), jnp.float32)],
        ),
    )(users.astype(jnp.int32), items.astype(jnp.int32), light_out_pad)
    return out[0, :batch]


# ----------------------------------------------------------------------------
# Jitted wrappers (padding / casts / slices fuse around the kernels)
# ----------------------------------------------------------------------------
@functools.partial(jax.jit, static_argnames=("n_layers",))
def _light_out_padded(graph_pad_bf16, emb_user, emb_item, *, n_layers):
    n_pad = graph_pad_bf16.shape[0]
    n = emb_user.shape[0] + emb_item.shape[0]
    d = emb_user.shape[1]
    d_pad = _round_up(d, _LANE)
    all_emb = jnp.concatenate([emb_user, emb_item], axis=0)
    all_emb_pad = jnp.pad(all_emb, ((0, n_pad - n), (0, d_pad - d)))
    return lightgcn_propagate(graph_pad_bf16, all_emb_pad, n_layers)


@functools.partial(jax.jit,
                   static_argnames=("n_layers", "num_users", "num_items"))
def _forward_impl(graph_pad_bf16, emb_user, emb_item, users, items, *,
                  n_layers, num_users, num_items):
    light_pad = _light_out_padded(graph_pad_bf16, emb_user, emb_item,
                                  n_layers=n_layers)
    users = jnp.clip(users.astype(jnp.int32), 0, num_users - 1)
    items = jnp.clip(items.astype(jnp.int32), 0, num_items - 1)
    return lightgcn_score(light_pad, users, items, num_users)


# ----------------------------------------------------------------------------
# Model wrapper
# ----------------------------------------------------------------------------
class LightGCNPallas:
    def __init__(self, num_users, num_items, latent_dim, n_layers, key):
        self.num_users = num_users
        self.num_items = num_items
        self.latent_dim = latent_dim
        self.n_layers = n_layers

        k_u, k_i, k_g = jax.random.split(key, 3)
        # nn.init.normal_(std=0.1) on both embedding tables
        self.embedding_user = 0.1 * jax.random.normal(
            k_u, (num_users, latent_dim), dtype=jnp.float32)
        self.embedding_item = 0.1 * jax.random.normal(
            k_i, (num_items, latent_dim), dtype=jnp.float32)

        # Synthetic normalized bipartite adjacency (dense stand-in for
        # dataset.getSparseGraph()):  A_hat = D^{-1/2} A D^{-1/2}
        n = num_users + num_items
        inter = (jax.random.uniform(k_g, (num_users, num_items)) < 0.1).astype(
            jnp.float32)
        adj = jnp.zeros((n, n), dtype=jnp.float32)
        adj = adj.at[:num_users, num_users:].set(inter)
        adj = adj.at[num_users:, :num_users].set(inter.T)
        deg = jnp.sum(adj, axis=1)
        d_inv_sqrt = jnp.where(deg > 0,
                               1.0 / jnp.sqrt(jnp.maximum(deg, 1e-12)), 0.0)
        self.graph = adj * d_inv_sqrt[:, None] * d_inv_sqrt[None, :]

        # Zero-padded bf16 copy fed to the kernels (lane/sublane friendly).
        self.n_pad = _padded_graph_size(n)
        self.graph_pad_bf16 = jnp.pad(
            self.graph, ((0, self.n_pad - n), (0, self.n_pad - n))
        ).astype(jnp.bfloat16)

    def computer(self):
        light_pad = _light_out_padded(self.graph_pad_bf16, self.embedding_user,
                                      self.embedding_item,
                                      n_layers=self.n_layers)
        n = self.num_users + self.num_items
        light = light_pad[:n, : self.latent_dim]
        return light[: self.num_users], light[self.num_users:]

    def forward(self, users, items):
        return _forward_impl(self.graph_pad_bf16, self.embedding_user,
                             self.embedding_item,
                             jnp.asarray(users), jnp.asarray(items),
                             n_layers=self.n_layers,
                             num_users=self.num_users,
                             num_items=self.num_items)


if __name__ == "__main__":
    key = jax.random.PRNGKey(0)
    num_users, num_items = 48, 80        # N = 128
    latent_dim, n_layers = 32, 3
    batch = 8

    model = LightGCNPallas(num_users, num_items, latent_dim, n_layers, key)

    k1, k2 = jax.random.split(jax.random.PRNGKey(1))
    users = jax.random.randint(k1, (batch,), 0, num_users, dtype=jnp.int32)
    items = jax.random.randint(k2, (batch,), 0, num_items, dtype=jnp.int32)

    gamma = model.forward(users, items)
    jax.block_until_ready(gamma)

    # Pure-JAX reference matched to kernel numerics
    # (bf16 G, bf16 streamed layer operand, f32 accumulation / layer sum).
    graph_bf16 = model.graph.astype(jnp.bfloat16)
    all_emb = jnp.concatenate([model.embedding_user, model.embedding_item],
                              axis=0)
    acc = all_emb
    cur = all_emb.astype(jnp.bfloat16)
    for _ in range(n_layers):
        nxt = jnp.dot(graph_bf16, cur, preferred_element_type=jnp.float32)
        acc = acc + nxt
        cur = nxt.astype(jnp.bfloat16)
    light_out = acc / float(n_layers + 1)
    ref = jnp.sum(light_out[users] * light_out[num_users + items], axis=1)

    assert gamma.shape == (batch,)
    assert jnp.allclose(gamma, ref, atol=2e-3, rtol=2e-3), (gamma, ref)

    print("KERNEL_OK")
</pallas_src>

<mosaic_0001>
module attributes {stable_mosaic.version = 11 : i64} {
  func.func @_gcn_layer_kernel(%arg0: i32, %arg1: i32, %arg2: memref<128x128xbf16, #tpu.memory_space<vmem>>, %arg3: memref<128x128xbf16, #tpu.memory_space<vmem>>, %arg4: memref<128x128xf32, #tpu.memory_space<vmem>>, %arg5: memref<128x128xf32, #tpu.memory_space<vmem>>, %arg6: memref<128x128xbf16, #tpu.memory_space<vmem>>, %arg7: memref<128x128xf32, #tpu.memory_space<vmem>>) attributes {dimension_semantics = [#tpu.dimension_semantics<parallel>, #tpu.dimension_semantics<arbitrary>], iteration_bounds = array<i64: 1, 1>, scalar_prefetch = 0 : i64, scratch_operands = 1 : i64, tpu.core_type = #tpu.core_type<tc>, window_params = [{transform_indices = @transform_0, window_bounds = array<i64: 128, 128>}, {transform_indices = @transform_1, window_bounds = array<i64: 128, 128>}, {transform_indices = @transform_2, window_bounds = array<i64: 128, 128>}, {transform_indices = @transform_3, window_bounds = array<i64: 128, 128>}, {transform_indices = @transform_4, window_bounds = array<i64: 128, 128>}]} {
    %c0_i32 = arith.constant 0 : i32
    %0 = arith.cmpi eq, %arg1, %c0_i32 : i32
    %1 = arith.extui %0 : i1 to i32
    %c0_i32_0 = arith.constant 0 : i32
    %2 = arith.cmpi ne, %1, %c0_i32_0 : i32
    scf.if %2 {
      %cst_10 = arith.constant 0.000000e+00 : f32
      %12 = vector.broadcast %cst_10 : f32 to vector<128x128xf32>
      %c0_11 = arith.constant 0 : index
      %c0_12 = arith.constant 0 : index
      %13 = vector.load %arg7[%c0_11, %c0_12] : memref<128x128xf32, #tpu.memory_space<vmem>>, vector<128x128xf32>
      tpu.vector_store %arg7[%c0_11, %c0_12], %12 {strides = array<i32>} : memref<128x128xf32, #tpu.memory_space<vmem>>, vector<128x128xf32>,
    } else {
    }
    %c0 = arith.constant 0 : index
    %c0_1 = arith.constant 0 : index
    %3 = vector.load %arg7[%c0, %c0_1] : memref<128x128xf32, #tpu.memory_space<vmem>>, vector<128x128xf32>
    %c0_2 = arith.constant 0 : index
    %c0_3 = arith.constant 0 : index
    %4 = vector.load %arg2[%c0_2, %c0_3] : memref<128x128xbf16, #tpu.memory_space<vmem>>, vector<128x128xbf16>
    %c0_4 = arith.constant 0 : index
    %c0_5 = arith.constant 0 : index
    %5 = vector.load %arg3[%c0_4, %c0_5] : memref<128x128xbf16, #tpu.memory_space<vmem>>, vector<128x128xbf16>
    %cst = arith.constant dense<0.000000e+00> : vector<128x128xf32>
    %6 = tpu.matmul %4, %5, %cst {dimension_numbers = #tpu.dot_dimension_numbers<[1], [0], [0], [1], [0, 0, 1, 1], [], []>} : vector<128x128xbf16>, vector<128x128xbf16>, vector<128x128xf32> -> vector<128x128xf32>
    %7 = arith.addf %3, %6 : vector<128x128xf32>
    %c0_6 = arith.constant 0 : index
    %c0_7 = arith.constant 0 : index
    %8 = vector.load %arg7[%c0_6, %c0_7] : memref<128x128xf32, #tpu.memory_space<vmem>>, vector<128x128xf32>
    tpu.vector_store %arg7[%c0_6, %c0_7], %7 {strides = array<i32>} : memref<128x128xf32, #tpu.memory_space<vmem>>, vector<128x128xf32>,
    %c0_i32_8 = arith.constant 0 : i32
    %9 = arith.cmpi eq, %arg1, %c0_i32_8 : i32
    %10 = arith.extui %9 : i1 to i32
    %c0_i32_9 = arith.constant 0 : i32
    %11 = arith.cmpi ne, %10, %c0_i32_9 : i32
    scf.if %11 {
      %c0_10 = arith.constant 0 : index
      %c0_11 = arith.constant 0 : index
      %12 = vector.load %arg4[%c0_10, %c0_11] : memref<128x128xf32, #tpu.memory_space<vmem>>, vector<128x128xf32>
      %c0_12 = arith.constant 0 : index
      %c0_13 = arith.constant 0 : index
      %13 = vector.load %arg7[%c0_12, %c0_13] : memref<128x128xf32, #tpu.memory_space<vmem>>, vector<128x128xf32>
      %14 = arith.addf %12, %13 : vector<128x128xf32>
      %c0_14 = arith.constant 0 : index
      %c0_15 = arith.constant 0 : index
      %15 = vector.load %arg5[%c0_14, %c0_15] : memref<128x128xf32, #tpu.memory_space<vmem>>, vector<128x128xf32>
      tpu.vector_store %arg5[%c0_14, %c0_15], %14 {strides = array<i32>} : memref<128x128xf32, #tpu.memory_space<vmem>>, vector<128x128xf32>,
      %c0_16 = arith.constant 0 : index
      %c0_17 = arith.constant 0 : index
      %16 = vector.load %arg7[%c0_16, %c0_17] : memref<128x128xf32, #tpu.memory_space<vmem>>, vector<128x128xf32>
      %17 = arith.truncf %16 : vector<128x128xf32> to vector<128x128xbf16>
      %c0_18 = arith.constant 0 : index
      %c0_19 = arith.constant 0 : index
      %18 = vector.load %arg6[%c0_18, %c0_19] : memref<128x128xbf16, #tpu.memory_space<vmem>>, vector<128x128xbf16>
      tpu.vector_store %arg6[%c0_18, %c0_19], %17 {strides = array<i32>} : memref<128x128xbf16, #tpu.memory_space<vmem>>, vector<128x128xbf16>,
    } else {
    }
    return
  }
  func.func @transform_0(%arg0: i32, %arg1: i32) -> (i32, i32) {
    %c0_i32 = arith.constant 0 : i32
    return %arg0, %arg1 : i32, i32
  }
  func.func @transform_1(%arg0: i32, %arg1: i32) -> (i32, i32) {
    %c0_i32 = arith.constant 0 : i32
    %c0_i32_0 = arith.constant 0 : i32
    return %arg1, %c0_i32 : i32, i32
  }
  func.func @transform_2(%arg0: i32, %arg1: i32) -> (i32, i32) {
    %c0_i32 = arith.constant 0 : i32
    %c0_i32_0 = arith.constant 0 : i32
    return %arg0, %c0_i32 : i32, i32
  }
  func.func @transform_3(%arg0: i32, %arg1: i32) -> (i32, i32) {
    %c0_i32 = arith.constant 0 : i32
    %c0_i32_0 = arith.constant 0 : i32
    return %arg0, %c0_i32 : i32, i32
  }
  func.func @transform_4(%arg0: i32, %arg1: i32) -> (i32, i32) {
    %c0_i32 = arith.constant 0 : i32
    %c0_i32_0 = arith.constant 0 : i32
    return %arg0, %c0_i32 : i32, i32
  }
}

module attributes {stable_mosaic.version = 11 : i64} {
  func.func @_gcn_layer_kernel(%arg0: i32, %arg1: i32, %arg2: memref<128x128xbf16, #tpu.memory_space<vmem>>, %arg3: memref<128x128xbf16, #tpu.memory_space<vmem>>, %arg4: memref<128x128xf32, #tpu.memory_space<vmem>>, %arg5: memref<128x128xf32, #tpu.memory_space<vmem>>, %arg6: memref<128x128xbf16, #tpu.memory_space<vmem>>, %arg7: memref<128x128xf32, #tpu.memory_space<vmem>>) attributes {dimension_semantics = [#tpu.dimension_semantics<parallel>, #tpu.dimension_semantics<arbitrary>], iteration_bounds = array<i64: 1, 1>, scalar_prefetch = 0 : i64, scratch_operands = 1 : i64, tpu.core_type = #tpu.core_type<tc>, window_params = [{transform_indices = @transform_0, window_bounds = array<i64: 128, 128>}, {transform_indices = @transform_1, window_bounds = array<i64: 128, 128>}, {transform_indices = @transform_2, window_bounds = array<i64: 128, 128>}, {transform_indices = @transform_3, window_bounds = array<i64: 128, 128>}, {transform_indices = @transform_4, window_bounds = array<i64: 128, 128>}]} {
    %c0_i32 = arith.constant 0 : i32
    %0 = arith.cmpi eq, %arg1, %c0_i32 : i32
    %1 = arith.extui %0 : i1 to i32
    %c0_i32_0 = arith.constant 0 : i32
    %2 = arith.cmpi ne, %1, %c0_i32_0 : i32
    scf.if %2 {
      %cst_10 = arith.constant 0.000000e+00 : f32
      %12 = vector.broadcast %cst_10 : f32 to vector<128x128xf32>
      %c0_11 = arith.constant 0 : index
      %c0_12 = arith.constant 0 : index
      %13 = vector.load %arg7[%c0_11, %c0_12] : memref<128x128xf32, #tpu.memory_space<vmem>>, vector<128x128xf32>
      tpu.vector_store %arg7[%c0_11, %c0_12], %12 {strides = array<i32>} : memref<128x128xf32, #tpu.memory_space<vmem>>, vector<128x128xf32>,
    } else {
    }
    %c0 = arith.constant 0 : index
    %c0_1 = arith.constant 0 : index
    %3 = vector.load %arg7[%c0, %c0_1] : memref<128x128xf32, #tpu.memory_space<vmem>>, vector<128x128xf32>
    %c0_2 = arith.constant 0 : index
    %c0_3 = arith.constant 0 : index
    %4 = vector.load %arg2[%c0_2, %c0_3] : memref<128x128xbf16, #tpu.memory_space<vmem>>, vector<128x128xbf16>
    %c0_4 = arith.constant 0 : index
    %c0_5 = arith.constant 0 : index
    %5 = vector.load %arg3[%c0_4, %c0_5] : memref<128x128xbf16, #tpu.memory_space<vmem>>, vector<128x128xbf16>
    %cst = arith.constant dense<0.000000e+00> : vector<128x128xf32>
    %6 = tpu.matmul %4, %5, %cst {dimension_numbers = #tpu.dot_dimension_numbers<[1], [0], [0], [1], [0, 0, 1, 1], [], []>} : vector<128x128xbf16>, vector<128x128xbf16>, vector<128x128xf32> -> vector<128x128xf32>
    %7 = arith.addf %3, %6 : vector<128x128xf32>
    %c0_6 = arith.constant 0 : index
    %c0_7 = arith.constant 0 : index
    %8 = vector.load %arg7[%c0_6, %c0_7] : memref<128x128xf32, #tpu.memory_space<vmem>>, vector<128x128xf32>
    tpu.vector_store %arg7[%c0_6, %c0_7], %7 {strides = array<i32>} : memref<128x128xf32, #tpu.memory_space<vmem>>, vector<128x128xf32>,
    %c0_i32_8 = arith.constant 0 : i32
    %9 = arith.cmpi eq, %arg1, %c0_i32_8 : i32
    %10 = arith.extui %9 : i1 to i32
    %c0_i32_9 = arith.constant 0 : i32
    %11 = arith.cmpi ne, %10, %c0_i32_9 : i32
    scf.if %11 {
      %c0_10 = arith.constant 0 : index
      %c0_11 = arith.constant 0 : index
      %12 = vector.load %arg4[%c0_10, %c0_11] : memref<128x128xf32, #tpu.memory_space<vmem>>, vector<128x128xf32>
      %c0_12 = arith.constant 0 : index
      %c0_13 = arith.constant 0 : index
      %13 = vector.load %arg7[%c0_12, %c0_13] : memref<128x128xf32, #tpu.memory_space<vmem>>, vector<128x128xf32>
      %14 = arith.addf %12, %13 : vector<128x128xf32>
      %c0_14 = arith.constant 0 : index
      %c0_15 = arith.constant 0 : index
      %15 = vector.load %arg5[%c0_14, %c0_15] : memref<128x128xf32, #tpu.memory_space<vmem>>, vector<128x128xf32>
      tpu.vector_store %arg5[%c0_14, %c0_15], %14 {strides = array<i32>} : memref<128x128xf32, #tpu.memory_space<vmem>>, vector<128x128xf32>,
      %c0_16 = arith.constant 0 : index
      %c0_17 = arith.constant 0 : index
      %16 = vector.load %arg7[%c0_16, %c0_17] : memref<128x128xf32, #tpu.memory_space<vmem>>, vector<128x128xf32>
      %17 = arith.truncf %16 : vector<128x128xf32> to vector<128x128xbf16>
      %c0_18 = arith.constant 0 : index
      %c0_19 = arith.constant 0 : index
      %18 = vector.load %arg6[%c0_18, %c0_19] : memref<128x128xbf16, #tpu.memory_space<vmem>>, vector<128x128xbf16>
      tpu.vector_store %arg6[%c0_18, %c0_19], %17 {strides = array<i32>} : memref<128x128xbf16, #tpu.memory_space<vmem>>, vector<128x128xbf16>,
    } else {
    }
    return
  }
  func.func @transform_0(%arg0: i32, %arg1: i32) -> (i32, i32) {
    %c0_i32 = arith.constant 0 : i32
    return %arg0, %arg1 : i32, i32
  }
  func.func @transform_1(%arg0: i32, %arg1: i32) -> (i32, i32) {
    %c0_i32 = arith.constant 0 : i32
    %c0_i32_0 = arith.constant 0 : i32
    return %arg1, %c0_i32 : i32, i32
  }
  func.func @transform_2(%arg0: i32, %arg1: i32) -> (i32, i32) {
    %c0_i32 = arith.constant 0 : i32
    %c0_i32_0 = arith.constant 0 : i32
    return %arg0, %c0_i32 : i32, i32
  }
  func.func @transform_3(%arg0: i32, %arg1: i32) -> (i32, i32) {
    %c0_i32 = arith.constant 0 : i32
    %c0_i32_0 = arith.constant 0 : i32
    return %arg0, %c0_i32 : i32, i32
  }
  func.func @transform_4(%arg0: i32, %arg1: i32) -> (i32, i32) {
    %c0_i32 = arith.constant 0 : i32
    %c0_i32_0 = arith.constant 0 : i32
    return %arg0, %c0_i32 : i32, i32
  }
}

</mosaic_0001>

<bundles_post_ra>
// kernel: _light_out_padded.3
= control target key start
LH: loop header
LB: loop body
LE: loop exit
PB: predicated region body
PF: predicated region fallthrough
CT: control target
= control target key end

     0   :  { %s849_s1 = inlined_call_operand.vmem [shape: bf16[128,128], index: 1, kind: input, shape index: {}]   ;;  %s850_s0 = inlined_call_operand.vmem [shape: bf16[128,128], index: 0, kind: input, shape index: {}]   ;;  %s851_s2 = inlined_call_operand.vmem [shape: f32[128,128], index: 2, kind: input, shape index: {}, may-alias: {2,3}]   ;;  %s852_s3 = inlined_call_operand.vmem [shape: f32[128,128], index: 3, kind: output, shape index: {0}, may-alias: {2,3}]   ;;  %s853_s4 = inlined_call_operand.vmem [shape: bf16[128,128], index: 4, kind: output, shape index: {1}]  }
   0x1   :  { %v640_v0 = vld [vmem:[%s849_s1] sm:$0xff]   ;;  %v641_v1 = vld [vmem:[%s849_s1 + $0x8] sm:$0xff]   ;;  %v642_v2 = vld [vmem:[%s849_s1 + $0x10] sm:$0xff]  }
   0x2   :  { %592 = vmatprep.subr.bf16.mxu0 %v640_v0  ;;  %624 = vmatprep.subr.bf16.mxu1 %v640_v0  ;;  %v643_v3 = vld [vmem:[%s849_s1 + $0x18] sm:$0xff]   ;;  %v648_v4 = vld [vmem:[%s850_s0] sm:$0xff]   ;;  %v645_v7 = vld [vmem:[%s849_s1 + $0x28] sm:$0xff]  }
   0x3   :  { %593 = vmatpush3.bf16.msra.mxu0 %v640_v0  ;;  %632 = vmatpush3.bf16.msra.mxu1 %v640_v0  ;;  %v649_v5 = vld [vmem:[%s850_s0 + $0x20] sm:$0xff]   ;;  %v646_v8 = vld [vmem:[%s849_s1 + $0x30] sm:$0xff]   ;;  %v647_v9 = vld [vmem:[%s849_s1 + $0x38] sm:$0xff]  }
   0x4   :  { %594 = vmatprep.subr.bf16.mxu0 %v641_v1  ;;  %625 = vmatprep.subr.bf16.mxu1 %v641_v1  ;;  %v644_v6 = vld [vmem:[%s849_s1 + $0x20] sm:$0xff]   ;;  %v650_v10 = vld [vmem:[%s850_s0 + $0x8] sm:$0xff]   ;;  %v652_v12 = vld [vmem:[%s850_s0 + $0x10] sm:$0xff]  }
   0x5   :  { %608 = vmatprep.mubr.bf16.mxu0 %v648_v4  ;;  %616 = vmatprep.mubr.bf16.mxu1 %v649_v5  ;;  %v651_v11 = vld [vmem:[%s850_s0 + $0x28] sm:$0xff]   ;;  %v653_v13 = vld [vmem:[%s850_s0 + $0x30] sm:$0xff]   ;;  %v654_v14 = vld [vmem:[%s850_s0 + $0x18] sm:$0xff]  }
   0x6   :  { %v655_v15 = vld [vmem:[%s850_s0 + $0x38] sm:$0xff]   ;;  %v315_v16 = vld [vmem:[%s851_s2 + $0x10] sm:$0xff]  ;;  %v313_v18 = vld [vmem:[%s851_s2] sm:$0xff] }
   0x7   :  { %595 = vmatpush3.bf16.msra.mxu0 %v641_v1  ;;  %633 = vmatpush3.bf16.msra.mxu1 %v641_v1  ;;  %v323_v17 = vld [vmem:[%s851_s2 + $0x50] sm:$0xff]  ;;  %v321_v19 = vld [vmem:[%s851_s2 + $0x40] sm:$0xff]  ;;  %v316_v22 = vld [vmem:[%s851_s2 + $0x18] sm:$0xff] }
   0x8   :  { %596 = vmatprep.subr.bf16.mxu0 %v642_v2  ;;  %626 = vmatprep.subr.bf16.mxu1 %v642_v2  ;;  %v324_v23 = vld [vmem:[%s851_s2 + $0x58] sm:$0xff]  ;;  %v314_v28 = vld [vmem:[%s851_s2 + $0x8] sm:$0xff] }
   0x9   :  { %v322_v29 = vld [vmem:[%s851_s2 + $0x48] sm:$0xff] }
   0xb   :  { %597 = vmatpush3.bf16.msra.mxu0 %v642_v2  ;;  %634 = vmatpush3.bf16.msra.mxu1 %v642_v2 }
   0xc   :  { %598 = vmatprep.subr.bf16.mxu0 %v643_v3  ;;  %627 = vmatprep.subr.bf16.mxu1 %v643_v3 }
   0xf   :  { %599 = vmatpush3.bf16.msra.mxu0 %v643_v3  ;;  %635 = vmatpush3.bf16.msra.mxu1 %v643_v3 }
  0x10   :  { %600 = vmatprep.subr.bf16.mxu0 %v644_v6  ;;  %628 = vmatprep.subr.bf16.mxu1 %v644_v6 }
  0x13   :  { %601 = vmatpush3.bf16.msra.mxu0 %v644_v6  ;;  %636 = vmatpush3.bf16.msra.mxu1 %v644_v6 }
  0x14   :  { %602 = vmatprep.subr.bf16.mxu0 %v645_v7  ;;  %629 = vmatprep.subr.bf16.mxu1 %v645_v7 }
  0x17   :  { %603 = vmatpush3.bf16.msra.mxu0 %v645_v7  ;;  %637 = vmatpush3.bf16.msra.mxu1 %v645_v7 }
  0x18   :  { %604 = vmatprep.subr.bf16.mxu0 %v646_v8  ;;  %630 = vmatprep.subr.bf16.mxu1 %v646_v8 }
  0x1b   :  { %605 = vmatpush3.bf16.msra.mxu0 %v646_v8  ;;  %638 = vmatpush3.bf16.msra.mxu1 %v646_v8 }
  0x1c   :  { %606 = vmatprep.subr.bf16.mxu0 %v647_v9  ;;  %631 = vmatprep.subr.bf16.mxu1 %v647_v9 }
  0x1f   :  { %607 = vmatpush3.bf16.msra.mxu0 %v647_v9  ;;  %639 = vmatpush3.bf16.msra.mxu1 %v647_v9 }
  0x22   :  { %609 = vmatmul.mubr.bf16.vlgmr.msra.gmra.mrb[0].mxu0 %v650_v10  ;;  %617 = vmatmul.mubr.bf16.vlgmr.msra.gmra.mrb[0].mxu1 %v651_v11 }
  0x23   :  { %612 = vmatprep.mubr.bf16.mxu0 %v652_v12  ;;  %620 = vmatprep.mubr.bf16.mxu1 %v653_v13 }
  0x2a   :  { %613 = vmatmul.mubr.bf16.gmra.mrb[4].mxu0 %v654_v14  ;;  %621 = vmatmul.mubr.bf16.gmra.mrb[4].mxu1 %v655_v15 }
  0xf5   :  { %v610_v20 = vpop.f32.mrb[0].mxu0  ;;  %v618_v21 = vpop.f32.mrb[0].mxu1 }
  0xf6   :  { %v347_v24 = vadd.f32 %v610_v20, %v315_v16  ;;  %v355_v25 = vadd.f32 %v618_v21, %v323_v17  ;;  %v215_v26 = vpop.f32.mrb[1].mxu0  ;;  %v247_v27 = vpop.f32.mrb[1].mxu1 }
  0xf7   :  { %v345_v30 = vadd.f32 %v313_v18, %v215_v26  ;;  %v353_v31 = vadd.f32 %v321_v19, %v247_v27  ;;  %v611_v32 = vpop.f32.mrb[2].mxu0  ;;  %v619_v33 = vpop.f32.mrb[2].mxu1 }
  0xf8   :  { %363 = vst [vmem:[%s852_s3 + $0x10] sm:$0xff] %v347_v24  ;;  %371 = vst [vmem:[%s852_s3 + $0x50] sm:$0xff] %v355_v25  ;;  %v348_v34 = vadd.f32 %v611_v32, %v316_v22  ;;  %v537_v35 = vpack.c.bf16 %v611_v32, %v610_v20  ;;  %v356_v36 = vadd.f32 %v619_v33, %v324_v23  ;;  %v218_v38 = vpop.f32.mrb[3].mxu0  ;;  %v250_v39 = vpop.f32.mrb[3].mxu1 }
  0xf9   :  { %v557_v37 = vpack.c.bf16 %v619_v33, %v618_v21  ;;  %361 = vst [vmem:[%s852_s3] sm:$0xff] %v345_v30  ;;  %369 = vst [vmem:[%s852_s3 + $0x40] sm:$0xff] %v353_v31  ;;  %v346_v40 = vadd.f32 %v314_v28, %v218_v38  ;;  %v532_v41 = vpack.c.bf16 %v218_v38, %v215_v26 }
  0xfa   :  { %v354_v42 = vadd.f32 %v322_v29, %v250_v39  ;;  %v552_v43 = vpack.c.bf16 %v250_v39, %v247_v27  ;;  %364 = vst [vmem:[%s852_s3 + $0x18] sm:$0xff] %v348_v34  ;;  %569 = vst [vmem:[%s853_s4 + $0x8] sm:$0xff] %v537_v35  }
  0xfb   :  { %372 = vst [vmem:[%s852_s3 + $0x58] sm:$0xff] %v356_v36  ;;  %573 = vst [vmem:[%s853_s4 + $0x28] sm:$0xff] %v557_v37  }
  0xfc   :  { %362 = vst [vmem:[%s852_s3 + $0x8] sm:$0xff] %v346_v40  ;;  %533 = vst [vmem:[%s853_s4] sm:$0xff] %v532_v41  }
  0xfd   :  { %370 = vst [vmem:[%s852_s3 + $0x48] sm:$0xff] %v354_v42  ;;  %572 = vst [vmem:[%s853_s4 + $0x20] sm:$0xff] %v552_v43   ;;  %v614_v48 = vpop.f32.mrb[4].mxu0  ;;  %v622_v49 = vpop.f32.mrb[4].mxu1 }
  0xfe   :  { %v231_v54 = vpop.f32.mrb[5].mxu0  ;;  %v263_v55 = vpop.f32.mrb[5].mxu1 }
  0xff   :  { %v615_v60 = vpop.f32.mrb[6].mxu0  ;;  %v623_v61 = vpop.f32.mrb[6].mxu1 }
 0x100   :  { %v547_v63 = vpack.c.bf16 %v615_v60, %v614_v48  ;;  %v567_v1 = vpack.c.bf16 %v623_v61, %v622_v49  ;;  %v234_v2 = vpop.f32.mrb[7].mxu0  ;;  %v266_v3 = vpop.f32.mrb[7].mxu1 }
 0x101   :  { %v542_v5 = vpack.c.bf16 %v234_v2, %v231_v54  ;;  %v562_v7 = vpack.c.bf16 %v266_v3, %v263_v55 }
 0x102   :  { %571 = vst [vmem:[%s853_s4 + $0x18] sm:$0xff] %v547_v63   ;;  %575 = vst [vmem:[%s853_s4 + $0x38] sm:$0xff] %v567_v1  }
 0x103   :  { %570 = vst [vmem:[%s853_s4 + $0x10] sm:$0xff] %v542_v5   ;;  %574 = vst [vmem:[%s853_s4 + $0x30] sm:$0xff] %v562_v7  }
 0x104   :  { %v319_v44 = vld [vmem:[%s851_s2 + $0x30] sm:$0xff]  ;;  %v317_v46 = vld [vmem:[%s851_s2 + $0x20] sm:$0xff]  ;;  %v320_v50 = vld [vmem:[%s851_s2 + $0x38] sm:$0xff] }
 0x105   :  { %v327_v45 = vld [vmem:[%s851_s2 + $0x70] sm:$0xff]  ;;  %v325_v47 = vld [vmem:[%s851_s2 + $0x60] sm:$0xff]  ;;  %v328_v51 = vld [vmem:[%s851_s2 + $0x78] sm:$0xff]  ;;  %v351_v52 = vadd.f32 %v614_v48, %v319_v44  ;;  %v349_v58 = vadd.f32 %v317_v46, %v231_v54  ;;  %v352_v62 = vadd.f32 %v615_v60, %v320_v50 }
 0x106   :  { %v359_v53 = vadd.f32 %v622_v49, %v327_v45  ;;  %v318_v56 = vld [vmem:[%s851_s2 + $0x28] sm:$0xff]  ;;  %v357_v59 = vadd.f32 %v325_v47, %v263_v55  ;;  %v360_v0 = vadd.f32 %v623_v61, %v328_v51 }
 0x107   :  { %v326_v57 = vld [vmem:[%s851_s2 + $0x68] sm:$0xff]  ;;  %v350_v4 = vadd.f32 %v318_v56, %v234_v2 }
 0x108   :  { %367 = vst [vmem:[%s852_s3 + $0x30] sm:$0xff] %v351_v52  ;;  %375 = vst [vmem:[%s852_s3 + $0x70] sm:$0xff] %v359_v53  ;;  %v358_v6 = vadd.f32 %v326_v57, %v266_v3 }
 0x109   :  { %365 = vst [vmem:[%s852_s3 + $0x20] sm:$0xff] %v349_v58  ;;  %373 = vst [vmem:[%s852_s3 + $0x60] sm:$0xff] %v357_v59 }
 0x10a   :  { %368 = vst [vmem:[%s852_s3 + $0x38] sm:$0xff] %v352_v62  ;;  %376 = vst [vmem:[%s852_s3 + $0x78] sm:$0xff] %v360_v0 }
 0x10b   :  { %366 = vst [vmem:[%s852_s3 + $0x28] sm:$0xff] %v350_v4  ;;  %374 = vst [vmem:[%s852_s3 + $0x68] sm:$0xff] %v358_v6 }

// kernel: _light_out_padded.5
= control target key start
LH: loop header
LB: loop body
LE: loop exit
PB: predicated region body
PF: predicated region fallthrough
CT: control target
= control target key end

     0   :  { %s887_s0 = inlined_call_operand.vmem [shape: bf16[128,128], index: 0, kind: input, shape index: {}]   ;;  %s888_s1 = inlined_call_operand.vmem [shape: bf16[128,128], index: 1, kind: input, shape index: {}]   ;;  %s889_s2 = inlined_call_operand.vmem [shape: f32[128,128], index: 2, kind: input, shape index: {}, may-alias: {2,3}]   ;;  %s890_s3 = inlined_call_operand.vmem [shape: f32[128,128], index: 3, kind: output, shape index: {0}, may-alias: {2,3}]   ;;  %s891_s4 = inlined_call_operand.hbm [shape: bf16[128,128], index: 4, kind: output, shape index: {1}]  }
   0x1   :  { %v656_v0 = vld [vmem:[%s888_s1] sm:$0xff]   ;;  %v657_v1 = vld [vmem:[%s888_s1 + $0x8] sm:$0xff]   ;;  %v658_v2 = vld [vmem:[%s888_s1 + $0x10] sm:$0xff]  }
   0x2   :  { %605 = vmatprep.subr.bf16.mxu0 %v656_v0  ;;  %637 = vmatprep.subr.bf16.mxu1 %v656_v0  ;;  %v659_v3 = vld [vmem:[%s888_s1 + $0x18] sm:$0xff]   ;;  %v664_v4 = vld [vmem:[%s887_s0] sm:$0xff]   ;;  %v661_v7 = vld [vmem:[%s888_s1 + $0x28] sm:$0xff]  }
   0x3   :  { %606 = vmatpush3.bf16.msra.mxu0 %v656_v0  ;;  %645 = vmatpush3.bf16.msra.mxu1 %v656_v0  ;;  %v665_v5 = vld [vmem:[%s887_s0 + $0x20] sm:$0xff]  }
   0x4   :  { %607 = vmatprep.subr.bf16.mxu0 %v657_v1  ;;  %638 = vmatprep.subr.bf16.mxu1 %v657_v1  ;;  %v660_v6 = vld [vmem:[%s888_s1 + $0x20] sm:$0xff]  }
   0x5   :  { %621 = vmatprep.mubr.bf16.mxu0 %v664_v4  ;;  %629 = vmatprep.mubr.bf16.mxu1 %v665_v5 }
   0x7   :  { %608 = vmatpush3.bf16.msra.mxu0 %v657_v1  ;;  %646 = vmatpush3.bf16.msra.mxu1 %v657_v1 }
   0x8   :  { %609 = vmatprep.subr.bf16.mxu0 %v658_v2  ;;  %639 = vmatprep.subr.bf16.mxu1 %v658_v2 }
   0xb   :  { %610 = vmatpush3.bf16.msra.mxu0 %v658_v2  ;;  %647 = vmatpush3.bf16.msra.mxu1 %v658_v2 }
   0xc   :  { %611 = vmatprep.subr.bf16.mxu0 %v659_v3  ;;  %640 = vmatprep.subr.bf16.mxu1 %v659_v3 }
   0xf   :  { %612 = vmatpush3.bf16.msra.mxu0 %v659_v3  ;;  %648 = vmatpush3.bf16.msra.mxu1 %v659_v3 }
  0x10   :  { %613 = vmatprep.subr.bf16.mxu0 %v660_v6  ;;  %641 = vmatprep.subr.bf16.mxu1 %v660_v6 }
  0x11   :  { %10 = vsyncpa [#allocation4], 0  ;;  %v662_v8 = vld [vmem:[%s888_s1 + $0x30] sm:$0xff]   ;;  %v663_v9 = vld [vmem:[%s888_s1 + $0x38] sm:$0xff]   ;;  %s696_s9 = smov [#allocation3]  }
  0x12   :  { %v666_v10 = vld [vmem:[%s887_s0 + $0x8] sm:$0xff]   ;;  %v668_v12 = vld [vmem:[%s887_s0 + $0x10] sm:$0xff]   ;;  %v670_v14 = vld [vmem:[%s887_s0 + $0x18] sm:$0xff]   ;;  %s481_s10 = sshll.u32 %s696_s9, 4  ;;  %s850_s10 = int_to_ptr.vmem [resolvable:$true] %s481_s10 }
  0x13   :  { %614 = vmatpush3.bf16.msra.mxu0 %v660_v6  ;;  %649 = vmatpush3.bf16.msra.mxu1 %v660_v6  ;;  %v667_v11 = vld [vmem:[%s887_s0 + $0x28] sm:$0xff]   ;;  %v669_v13 = vld [vmem:[%s887_s0 + $0x30] sm:$0xff]   ;;  %v671_v15 = vld [vmem:[%s887_s0 + $0x38] sm:$0xff]   ;;  %s672_s28 = scalar_lea.vmem %s850_s10, 1024  ;;  %p677_p1 = scmp.lt.s32.totalorder %s850_s10, %s850_s10 }
  0x14   :  { %615 = vmatprep.subr.bf16.mxu0 %v661_v7  ;;  %642 = vmatprep.subr.bf16.mxu1 %v661_v7  ;;  %v316_v16 = vld [vmem:[%s889_s2 + $0x10] sm:$0xff]  ;;  %v314_v18 = vld [vmem:[%s889_s2] sm:$0xff]  ;;  %v317_v22 = vld [vmem:[%s889_s2 + $0x18] sm:$0xff]  ;;  %p673_p0 = scmp.ne.s32.totalorder %s850_s10, %s672_s28  ;;  %p678_p2 = scmp.lt.s32.totalorder %s672_s28, %s672_s28 }
  0x15   :  { %v324_v17 = vld [vmem:[%s889_s2 + $0x50] sm:$0xff]  ;;  %v322_v19 = vld [vmem:[%s889_s2 + $0x40] sm:$0xff]  ;;  %v325_v23 = vld [vmem:[%s889_s2 + $0x58] sm:$0xff] }
  0x16   :  { %v315_v28 = vld [vmem:[%s889_s2 + $0x8] sm:$0xff]  ;;  %p679_p3 = por %p678_p2, %p677_p1 }
  0x17   :  { %616 = vmatpush3.bf16.msra.mxu0 %v661_v7  ;;  %650 = vmatpush3.bf16.msra.mxu1 %v661_v7  ;;  %v323_v29 = vld [vmem:[%s889_s2 + $0x48] sm:$0xff] }
  0x18   :  { %617 = vmatprep.subr.bf16.mxu0 %v662_v8  ;;  %643 = vmatprep.subr.bf16.mxu1 %v662_v8  ;;  %p680_p4 = pnand %p679_p3, %p673_p0 }
  0x1b   :  { %618 = vmatpush3.bf16.msra.mxu0 %v662_v8  ;;  %651 = vmatpush3.bf16.msra.mxu1 %v662_v8 }
  0x1c   :  { %619 = vmatprep.subr.bf16.mxu0 %v663_v9  ;;  %644 = vmatprep.subr.bf16.mxu1 %v663_v9 }
  0x1f   :  { %620 = vmatpush3.bf16.msra.mxu0 %v663_v9  ;;  %652 = vmatpush3.bf16.msra.mxu1 %v663_v9 }
  0x22   :  { %622 = vmatmul.mubr.bf16.vlgmr.msra.gmra.mrb[0].mxu0 %v666_v10  ;;  %630 = vmatmul.mubr.bf16.vlgmr.msra.gmra.mrb[0].mxu1 %v667_v11 }
  0x23   :  { %625 = vmatprep.mubr.bf16.mxu0 %v668_v12  ;;  %633 = vmatprep.mubr.bf16.mxu1 %v669_v13 }
  0x2a   :  { %626 = vmatmul.mubr.bf16.gmra.mrb[4].mxu0 %v670_v14  ;;  %634 = vmatmul.mubr.bf16.gmra.mrb[4].mxu1 %v671_v15 }
  0xf5   :  { %v623_v20 = vpop.f32.mrb[0].mxu0  ;;  %v631_v21 = vpop.f32.mrb[0].mxu1 }
  0xf6   :  { %v348_v24 = vadd.f32 %v623_v20, %v316_v16  ;;  %v356_v25 = vadd.f32 %v631_v21, %v324_v17  ;;  %v216_v26 = vpop.f32.mrb[1].mxu0  ;;  %v248_v27 = vpop.f32.mrb[1].mxu1 }
  0xf7   :  { %v346_v30 = vadd.f32 %v314_v18, %v216_v26  ;;  %v354_v31 = vadd.f32 %v322_v19, %v248_v27  ;;  %v624_v32 = vpop.f32.mrb[2].mxu0  ;;  %v632_v33 = vpop.f32.mrb[2].mxu1 }
  0xf8   :  { %364 = vst [vmem:[%s890_s3 + $0x10] sm:$0xff] %v348_v24  ;;  %372 = vst [vmem:[%s890_s3 + $0x50] sm:$0xff] %v356_v25  ;;  %v349_v34 = vadd.f32 %v624_v32, %v317_v22  ;;  %v550_v35 = vpack.c.bf16 %v624_v32, %v623_v20  ;;  %v357_v36 = vadd.f32 %v632_v33, %v325_v23  ;;  %v219_v38 = vpop.f32.mrb[3].mxu0  ;;  %v251_v39 = vpop.f32.mrb[3].mxu1 }
  0xf9   :  { %v570_v37 = vpack.c.bf16 %v632_v33, %v631_v21  ;;  %362 = vst [vmem:[%s890_s3] sm:$0xff] %v346_v30  ;;  %370 = vst [vmem:[%s890_s3 + $0x40] sm:$0xff] %v354_v31  ;;  %v347_v40 = vadd.f32 %v315_v28, %v219_v38  ;;  %v545_v41 = vpack.c.bf16 %v219_v38, %v216_v26 }
  0xfa   :  { %v355_v42 = vadd.f32 %v323_v29, %v251_v39  ;;  %v565_v43 = vpack.c.bf16 %v251_v39, %v248_v27  ;;  %365 = vst [vmem:[%s890_s3 + $0x18] sm:$0xff] %v349_v34  ;;  %582 = vst [vmem:[#allocation3 + $0x8] sm:$0xff] %v550_v35  }
  0xfb   :  { %373 = vst [vmem:[%s890_s3 + $0x58] sm:$0xff] %v357_v36  ;;  %586 = vst [vmem:[#allocation3 + $0x28] sm:$0xff] %v570_v37  }
  0xfc   :  { %363 = vst [vmem:[%s890_s3 + $0x8] sm:$0xff] %v347_v40  ;;  %546 = vst [vmem:[#allocation3] sm:$0xff] %v545_v41  }
  0xfd   :  { %371 = vst [vmem:[%s890_s3 + $0x48] sm:$0xff] %v355_v42  ;;  %585 = vst [vmem:[#allocation3 + $0x20] sm:$0xff] %v565_v43   ;;  %v627_v48 = vpop.f32.mrb[4].mxu0  ;;  %v635_v49 = vpop.f32.mrb[4].mxu1 }
  0xfe   :  { %v232_v54 = vpop.f32.mrb[5].mxu0  ;;  %v264_v55 = vpop.f32.mrb[5].mxu1 }
  0xff   :  { %v628_v60 = vpop.f32.mrb[6].mxu0  ;;  %v636_v61 = vpop.f32.mrb[6].mxu1 }
 0x100   :  { %v560_v63 = vpack.c.bf16 %v628_v60, %v627_v48  ;;  %v580_v1 = vpack.c.bf16 %v636_v61, %v635_v49  ;;  %v235_v2 = vpop.f32.mrb[7].mxu0  ;;  %v267_v3 = vpop.f32.mrb[7].mxu1 }
 0x101   :  { %v555_v5 = vpack.c.bf16 %v235_v2, %v232_v54  ;;  %v575_v7 = vpack.c.bf16 %v267_v3, %v264_v55 }
 0x102   :  { %584 = vst [vmem:[#allocation3 + $0x18] sm:$0xff] %v560_v63   ;;  %588 = vst [vmem:[#allocation3 + $0x38] sm:$0xff] %v580_v1  }
 0x103   :  { %583 = vst [vmem:[#allocation3 + $0x10] sm:$0xff] %v555_v5   ;;  %587 = vst [vmem:[#allocation3 + $0x30] sm:$0xff] %v575_v7  }
 0x104   :  { %v320_v44 = vld [vmem:[%s889_s2 + $0x30] sm:$0xff]  ;;  %v318_v46 = vld [vmem:[%s889_s2 + $0x20] sm:$0xff]  ;;  %v321_v50 = vld [vmem:[%s889_s2 + $0x38] sm:$0xff] }
 0x105   :  { %v328_v45 = vld [vmem:[%s889_s2 + $0x70] sm:$0xff]  ;;  %v326_v47 = vld [vmem:[%s889_s2 + $0x60] sm:$0xff]  ;;  %v329_v51 = vld [vmem:[%s889_s2 + $0x78] sm:$0xff]  ;;  %v352_v52 = vadd.f32 %v627_v48, %v320_v44  ;;  %v350_v58 = vadd.f32 %v318_v46, %v232_v54  ;;  %v353_v62 = vadd.f32 %v628_v60, %v321_v50 }
 0x106   :  { %v360_v53 = vadd.f32 %v635_v49, %v328_v45  ;;  %v319_v56 = vld [vmem:[%s889_s2 + $0x28] sm:$0xff]  ;;  %v358_v59 = vadd.f32 %v326_v47, %v264_v55  ;;  %v361_v0 = vadd.f32 %v636_v61, %v329_v51 }
 0x107   :  { %v327_v57 = vld [vmem:[%s889_s2 + $0x68] sm:$0xff]  ;;  %v351_v4 = vadd.f32 %v319_v56, %v235_v2 }
 0x108   :  { %368 = vst [vmem:[%s890_s3 + $0x30] sm:$0xff] %v352_v52  ;;  %376 = vst [vmem:[%s890_s3 + $0x70] sm:$0xff] %v360_v53  ;;  %v359_v6 = vadd.f32 %v327_v57, %v267_v3 }
 0x109   :  { %366 = vst [vmem:[%s890_s3 + $0x20] sm:$0xff] %v350_v58  ;;  %374 = vst [vmem:[%s890_s3 + $0x60] sm:$0xff] %v358_v59 }
 0x10a   :  { %369 = vst [vmem:[%s890_s3 + $0x38] sm:$0xff] %v353_v62  ;;  %377 = vst [vmem:[%s890_s3 + $0x78] sm:$0xff] %v361_v0 }
 0x10b   :  { %367 = vst [vmem:[%s890_s3 + $0x28] sm:$0xff] %v351_v4  ;;  %375 = vst [vmem:[%s890_s3 + $0x68] sm:$0xff] %v359_v6 }
 0x10c   :  { %683 = shalt.err (!%p680_p4)
}
 0x10d   :  { %s684_s5 = scalar_lea.hbm %s891_s4, 1024 }
 0x10e   :  { %p685_p5 = scmp.ne.s32.totalorder %s891_s4, %s684_s5  ;;  %p688_p6 = scmp.lt.u32.totalorder %s684_s5, %s891_s4 }
 0x110   :  { %p690_p7 = pnand %p688_p6, %p685_p5 }
 0x112   :  { %693 = shalt.err (!%p690_p7)
}
 0x113   :  { %s697_s3 = smov 64   ;;  %s698_s11 = smov 4  }
 0x114   :  { %487 = dma.vmem_to_hbm [thread:$0]  %s850_s10, 1024, %s891_s4, [#allocation4], %s697_s3, %s697_s3, %s698_s11  }
 0x115   :  { %694 = dma.done.wait [#allocation4], 1024  }
 0x116   :  { %695 = vsyncadd [#allocation4], 4294966272 }
 0x117   :  { %493 = vsyncpa [#allocation4], 1 }

</bundles_post_ra>
